<compile_context>
chip_gen: v6e
topology: v6e:2x2x1
jax: 0.10.0
libtpu: 0.0.40
codegen_flags: <defaults>
</compile_context>

<pallas_src>
import functools

import jax
import jax.numpy as jnp
from jax import lax
from jax.experimental import pallas as pl
from jax.experimental.pallas import tpu as pltpu


def _mnr_loss_kernel(r1_ref, r2_ref, out_ref, *, scale: float, tile_b: int,
                     matmul_dtype):
    step = pl.program_id(0)

    r1 = r1_ref[...].astype(jnp.float32)          # (tile_b, D) current row tile
    r2 = r2_ref[...].astype(jnp.float32)          # (B, D) resident across grid

    # F.normalize(x, p=2, dim=1) == x / max(||x||, 1e-12)
    #                            == x * rsqrt(max(||x||^2, 1e-24))
    eps2 = 1e-24
    r1n = r1 * lax.rsqrt(jnp.maximum(jnp.sum(r1 * r1, axis=1, keepdims=True), eps2))
    r2n = r2 * lax.rsqrt(jnp.maximum(jnp.sum(r2 * r2, axis=1, keepdims=True), eps2))

    # scores[i, j] = <r1n[i], r2n[j]> * scale  — contract dim 1 of both operands,
    # no explicit transpose; bf16 operands, f32 accumulation on the MXU.
    scores = lax.dot_general(
        r1n.astype(matmul_dtype), r2n.astype(matmul_dtype),
        dimension_numbers=(((1,), (1,)), ((), ())),
        preferred_element_type=jnp.float32,
    ) * scale                                     # (tile_b, B) f32

    # Diagonal of the *global* score matrix for this tile: columns
    # [step*tile_b, step*tile_b + tile_b).  Take the matching r2 rows from the
    # resident VMEM block and compute the dot products directly (f32).
    start = step * tile_b
    if tile_b % 8 == 0:
        start = pl.multiple_of(start, 8)
    r2m = r2_ref[pl.ds(start, tile_b), :].astype(jnp.float32)
    r2m_n = r2m * lax.rsqrt(jnp.maximum(jnp.sum(r2m * r2m, axis=1, keepdims=True), eps2))
    diag = scale * jnp.sum(r1n * r2m_n, axis=1, keepdims=True)      # (tile_b, 1)

    # Row-wise logsumexp in f32 (full row is present: r2 block covers all B cols).
    m = jnp.max(scores, axis=1, keepdims=True)
    lse = m + jnp.log(jnp.sum(jnp.exp(scores - m), axis=1, keepdims=True))

    out_ref[...] = lse - diag                     # per-row cross-entropy loss


def _pick_tile_b(b: int) -> int:
    """Row-tile size: bounds per-step VMEM and obeys the sublane rule
    (tile is a multiple of 8 or equals the full batch)."""
    if b <= 256:
        return b
    for cand in (256, 128, 64, 32, 16, 8):
        if b % cand == 0:
            return cand
    return b  # fallback: single tile


def mn_ranking_loss(r1: jax.Array, r2: jax.Array, scale: float = 20.0, *,
                    matmul_dtype=jnp.bfloat16) -> jax.Array:
    """Pallas TPU implementation of MNRankingLoss.forward(r1, r2)."""
    assert r1.shape == r2.shape and r1.ndim == 2
    b, d = r1.shape

    tile_b = _pick_tile_b(b)
    num_tiles = b // tile_b if b % tile_b == 0 else 1
    if num_tiles == 1:
        tile_b = b

    kernel = functools.partial(
        _mnr_loss_kernel, scale=float(scale), tile_b=tile_b,
        matmul_dtype=matmul_dtype)

    per_row = pl.pallas_call(
        kernel,
        out_shape=jax.ShapeDtypeStruct((b, 1), jnp.float32),
        grid=(num_tiles,),
        in_specs=[
            pl.BlockSpec((tile_b, d), lambda i: (i, 0)),   # r1 row tile (pipelined)
            pl.BlockSpec((b, d), lambda i: (0, 0)),        # r2 full, resident
        ],
        out_specs=pl.BlockSpec((tile_b, 1), lambda i: (i, 0)),
        compiler_params=pltpu.CompilerParams(
            dimension_semantics=("parallel",)),            # v7x: shard tiles across TCs
    )(r1, r2)

    # CrossEntropyLoss(reduction='mean'): mean over the batch of per-row losses.
    return jnp.mean(per_row)


def _reference_loss(r1, r2, scale):
    r1 = r1.astype(jnp.float32)
    r2 = r2.astype(jnp.float32)
    r1n = r1 / jnp.maximum(jnp.linalg.norm(r1, axis=1, keepdims=True), 1e-12)
    r2n = r2 / jnp.maximum(jnp.linalg.norm(r2, axis=1, keepdims=True), 1e-12)
    scores = (r1n @ r2n.T) * scale
    lse = jax.scipy.special.logsumexp(scores, axis=1)
    diag = jnp.diagonal(scores)
    return jnp.mean(lse - diag)


if __name__ == "__main__":
    # Small shapes: batch=8 sentence pairs, hidden=32 embedding dim.
    key = jax.random.PRNGKey(0)
    k1, k2 = jax.random.split(key)
    B, D = 8, 32
    r1 = jax.random.normal(k1, (B, D), dtype=jnp.float32)
    r2 = jax.random.normal(k2, (B, D), dtype=jnp.float32)
    scale = 20.0  # params.scale (deterministic synthetic hyperparameter)

    ref = _reference_loss(r1, r2, scale)

    # f32 MXU path: tight check against the reference.
    loss_f32 = mn_ranking_loss(r1, r2, scale=scale, matmul_dtype=jnp.float32)
    jax.block_until_ready(loss_f32)
    assert jnp.allclose(loss_f32, ref, rtol=1e-4, atol=1e-4), (loss_f32, ref)

    # Default bf16-operand MXU path (f32 accumulation): looser tolerance.
    loss = mn_ranking_loss(r1, r2, scale=scale)
    jax.block_until_ready(loss)
    assert jnp.allclose(loss, ref, rtol=5e-2, atol=5e-2), (loss, ref)

    print("KERNEL_OK")
</pallas_src>

<mosaic_0001>
module attributes {stable_mosaic.version = 11 : i64} {
  func.func @_mnr_loss_kernel(%arg0: i32, %arg1: memref<8x32xf32, #tpu.memory_space<vmem>>, %arg2: memref<8x32xf32, #tpu.memory_space<vmem>>, %arg3: memref<8x1xf32, #tpu.memory_space<vmem>>) attributes {dimension_semantics = [#tpu.dimension_semantics<parallel>], iteration_bounds = array<i64: 1>, scalar_prefetch = 0 : i64, scratch_operands = 0 : i64, tpu.core_type = #tpu.core_type<tc>, window_params = [{transform_indices = @transform_0, window_bounds = array<i64: 8, 32>}, {pipeline_mode = #tpu.pipeline_mode<synchronous>, transform_indices = @transform_1, window_bounds = array<i64: 8, 32>}, {transform_indices = @transform_2, window_bounds = array<i64: 8, 1>}]} {
    %c0 = arith.constant 0 : index
    %c0_0 = arith.constant 0 : index
    %0 = vector.load %arg1[%c0, %c0_0] : memref<8x32xf32, #tpu.memory_space<vmem>>, vector<8x32xf32>
    %c0_1 = arith.constant 0 : index
    %c0_2 = arith.constant 0 : index
    %1 = vector.load %arg2[%c0_1, %c0_2] : memref<8x32xf32, #tpu.memory_space<vmem>>, vector<8x32xf32>
    %2 = arith.mulf %0, %0 : vector<8x32xf32>
    %cst = arith.constant dense<0.000000e+00> : vector<8xf32>
    %3 = vector.multi_reduction <add>, %2, %cst [1] : vector<8x32xf32> to vector<8xf32>
    %4 = vector.shape_cast %3 : vector<8xf32> to vector<8x1xf32>
    %cst_3 = arith.constant 1.000000e-24 : f32
    %5 = vector.broadcast %cst_3 : f32 to vector<8x1xf32>
    %6 = arith.maximumf %4, %5 : vector<8x1xf32>
    %7 = math.rsqrt %6 : vector<8x1xf32>
    %8 = vector.broadcast %7 : vector<8x1xf32> to vector<8x32xf32>
    %9 = arith.mulf %0, %8 : vector<8x32xf32>
    %10 = arith.mulf %1, %1 : vector<8x32xf32>
    %cst_4 = arith.constant dense<0.000000e+00> : vector<8xf32>
    %11 = vector.multi_reduction <add>, %10, %cst_4 [1] : vector<8x32xf32> to vector<8xf32>
    %12 = vector.shape_cast %11 : vector<8xf32> to vector<8x1xf32>
    %cst_5 = arith.constant 1.000000e-24 : f32
    %13 = vector.broadcast %cst_5 : f32 to vector<8x1xf32>
    %14 = arith.maximumf %12, %13 : vector<8x1xf32>
    %15 = math.rsqrt %14 : vector<8x1xf32>
    %16 = vector.broadcast %15 : vector<8x1xf32> to vector<8x32xf32>
    %17 = arith.mulf %1, %16 : vector<8x32xf32>
    %cst_6 = arith.constant dense<0.000000e+00> : vector<8x8xf32>
    %18 = tpu.matmul %9, %17, %cst_6 {dimension_numbers = #tpu.dot_dimension_numbers<[1], [1], [0], [0], [0, 0, 1, 0], [], []>} : vector<8x32xf32>, vector<8x32xf32>, vector<8x8xf32> -> vector<8x8xf32>
    %cst_7 = arith.constant 2.000000e+01 : f32
    %19 = vector.broadcast %cst_7 : f32 to vector<8x8xf32>
    %20 = arith.mulf %18, %19 : vector<8x8xf32>
    %c8_i32 = arith.constant 8 : i32
    %21 = arith.muli %arg0, %c8_i32 : i32
    %22 = tpu.assume_multiple %21, 8 : i32
    %23 = arith.index_cast %22 : i32 to index
    %c0_8 = arith.constant 0 : index
    %24 = vector.load %arg2[%23, %c0_8] : memref<8x32xf32, #tpu.memory_space<vmem>>, vector<8x32xf32>
    %25 = arith.mulf %24, %24 : vector<8x32xf32>
    %cst_9 = arith.constant dense<0.000000e+00> : vector<8xf32>
    %26 = vector.multi_reduction <add>, %25, %cst_9 [1] : vector<8x32xf32> to vector<8xf32>
    %27 = vector.shape_cast %26 : vector<8xf32> to vector<8x1xf32>
    %cst_10 = arith.constant 1.000000e-24 : f32
    %28 = vector.broadcast %cst_10 : f32 to vector<8x1xf32>
    %29 = arith.maximumf %27, %28 : vector<8x1xf32>
    %30 = math.rsqrt %29 : vector<8x1xf32>
    %31 = vector.broadcast %30 : vector<8x1xf32> to vector<8x32xf32>
    %32 = arith.mulf %24, %31 : vector<8x32xf32>
    %33 = arith.mulf %9, %32 : vector<8x32xf32>
    %cst_11 = arith.constant dense<0.000000e+00> : vector<8xf32>
    %34 = vector.multi_reduction <add>, %33, %cst_11 [1] : vector<8x32xf32> to vector<8xf32>
    %35 = vector.shape_cast %34 : vector<8xf32> to vector<8x1xf32>
    %cst_12 = arith.constant 2.000000e+01 : f32
    %36 = vector.broadcast %cst_12 : f32 to vector<8x1xf32>
    %37 = arith.mulf %36, %35 : vector<8x1xf32>
    %cst_13 = arith.constant dense<0xFF800000> : vector<8xf32>
    %38 = vector.multi_reduction <maximumf>, %20, %cst_13 [1] : vector<8x8xf32> to vector<8xf32>
    %39 = vector.shape_cast %38 : vector<8xf32> to vector<8x1xf32>
    %40 = vector.broadcast %39 : vector<8x1xf32> to vector<8x8xf32>
    %41 = arith.subf %20, %40 : vector<8x8xf32>
    %42 = math.exp %41 : vector<8x8xf32>
    %cst_14 = arith.constant dense<0.000000e+00> : vector<8xf32>
    %43 = vector.multi_reduction <add>, %42, %cst_14 [1] : vector<8x8xf32> to vector<8xf32>
    %44 = vector.shape_cast %43 : vector<8xf32> to vector<8x1xf32>
    %45 = math.log %44 : vector<8x1xf32>
    %46 = arith.addf %39, %45 : vector<8x1xf32>
    %47 = arith.subf %46, %37 : vector<8x1xf32>
    %c0_15 = arith.constant 0 : index
    %c0_16 = arith.constant 0 : index
    %48 = vector.load %arg3[%c0_15, %c0_16] : memref<8x1xf32, #tpu.memory_space<vmem>>, vector<8x1xf32>
    tpu.vector_store %arg3[%c0_15, %c0_16], %47 {strides = array<i32>} : memref<8x1xf32, #tpu.memory_space<vmem>>, vector<8x1xf32>,
    return
  }
  func.func @transform_0(%arg0: i32) -> (i32, i32) {
    %c0_i32 = arith.constant 0 : i32
    %c0_i32_0 = arith.constant 0 : i32
    return %arg0, %c0_i32 : i32, i32
  }
  func.func @transform_1(%arg0: i32) -> (i32, i32) {
    %c0_i32 = arith.constant 0 : i32
    %c0_i32_0 = arith.constant 0 : i32
    %c0_i32_1 = arith.constant 0 : i32
    return %c0_i32, %c0_i32_0 : i32, i32
  }
  func.func @transform_2(%arg0: i32) -> (i32, i32) {
    %c0_i32 = arith.constant 0 : i32
    %c0_i32_0 = arith.constant 0 : i32
    return %arg0, %c0_i32 : i32, i32
  }
}

</mosaic_0001>

<bundles_post_ra>
// kernel: tpu_custom_call.1
= control target key start
LH: loop header
LB: loop body
LE: loop exit
PB: predicated region body
PF: predicated region fallthrough
CT: control target
= control target key end

     0   :  { %7 = vsyncpa [#allocation3], 0  ;;  %s266_s0 = inlined_call_operand.hbm [shape: f32[8,32], index: 0, kind: input, shape index: {}]   ;;  %s267_s1 = inlined_call_operand.hbm [shape: f32[8,32], index: 1, kind: input, shape index: {}]   ;;  %s268_s2 = inlined_call_operand.vmem [shape: f32[8,1], index: 2, kind: output, shape index: {}]  }
   0x1   :  { %8 = vsyncpa [#allocation5], 0  ;;  %s233_s9 = smov [#allocation2]   ;;  %s234_s11 = smov [#allocation4]  }
   0x2   :  { %s15_s10 = sshll.u32 %s233_s9, 4  ;;  %s25_s12 = sshll.u32 %s234_s11, 4  ;;  %s16_s10 = int_to_ptr.vmem [resolvable:$true] %s15_s10  ;;  %s26_s12 = int_to_ptr.vmem [resolvable:$true] %s25_s12 }
   0x3   :  { %s197_s13 = scalar_lea.vmem %s16_s10, 128  ;;  %p202_p1 = scmp.lt.s32.totalorder %s16_s10, %s16_s10 }
   0x4   :  { %p198_p0 = scmp.ne.s32.totalorder %s16_s10, %s197_s13  ;;  %p203_p2 = scmp.lt.s32.totalorder %s197_s13, %s197_s13 }
   0x6   :  { %p204_p3 = por %p203_p2, %p202_p1 }
   0x8   :  { %p205_p4 = pnand %p204_p3, %p198_p0 }
   0xa   :  { %208 = shalt.err (!%p205_p4)
}
   0xb   :  { %18 = dma.hbm_to_vmem [thread:$0]  %s266_s0, 128, %s16_s10, [#allocation3]  }
   0xc   :  { %s217_s16 = scalar_lea.vmem %s26_s12, 128  ;;  %p222_p6 = scmp.lt.s32.totalorder %s26_s12, %s26_s12 }
   0xd   :  { %p218_p5 = scmp.ne.s32.totalorder %s26_s12, %s217_s16  ;;  %p223_p7 = scmp.lt.s32.totalorder %s217_s16, %s217_s16 }
   0xf   :  { %p224_p8 = por %p223_p7, %p222_p6 }
  0x11   :  { %p225_p9 = pnand %p224_p8, %p218_p5 }
  0x13   :  { %228 = shalt.err (!%p225_p9)
}
  0x14   :  { %28 = dma.hbm_to_vmem [thread:$0]  %s267_s1, 128, %s26_s12, [#allocation5]  }
  0x15   :  { %229 = dma.done.wait [#allocation3], 128  }
  0x16   :  { %230 = vsyncadd [#allocation3], 4294967168 }
  0x17   :  { %231 = dma.done.wait [#allocation5], 128  }
  0x18   :  { %232 = vsyncadd [#allocation5], 4294967168  ;;  %v36_v0 = vld [vmem:[#allocation4] sm:$0xff]  ;;  %vm38_vm0 = vcmask 261120   ;;  %v35_v1 = vld [vmem:[#allocation2] sm:$0xff]  ;;  %v235_v6 = vmov 0.0  }
  0x19   :  { %v45_v2 = vmul.f32 %v36_v0, %v36_v0  ;;  %v37_v3 = vmul.f32 %v35_v1, %v35_v1  ;;  %170 = vmatprep.subr.mxu0 %v235_v6  ;;  %vm236_vm1 = vmmov 0   ;;  %vm144_vm2 = vcmask 64512  }
  0x1a   :  { %172 = vmatprep.mubr.msk.f32.mxu0 %vm236_vm1, %v235_v6  ;;  %vm158_vm3 = vcmask 7168  }
  0x1b   :  { %v46_v4 = vsel %vm38_vm0, %v45_v2, 0.0  ;;  %v39_v5 = vsel %vm38_vm0, %v37_v3, 0.0 }
  0x1c   :  { %47 = vadd.xlane.f32.xlu0 %v46_v4 }
  0x20   :  { %40 = vadd.xlane.f32.xlu0 %v39_v5 }
  0xa5   :  { %v48_v7 = vpop.xlane.xlu0 %47 }
  0xa6   :  { %v49_v8 = vmax.f32 %v48_v7, 1e-24 }
  0xa8   :  { %179 = vrsqrt.f32 %v49_v8 }
  0xa9   :  { %v41_v9 = vpop.xlane.xlu0 %40 }
  0xaa   :  { %v42_v10 = vmax.f32 %v41_v9, 1e-24 }
  0xac   :  { %181 = vrsqrt.f32 %v42_v10 }
  0xb5   :  { %v180_v11 = vpop.eup %179 }
  0xb6   :  { %v51_v12 = vmul.f32 %v180_v11, %v36_v0 }
  0xb8   :  { %171 = vmatpush3.xpose.msk.msra.mxu0 %vm38_vm0, %v51_v12 }
  0xb9   :  { %v182_v13 = vpop.eup %181 }
  0xba   :  { %v44_v14 = vmul.f32 %v182_v13, %v35_v1 }
  0xbc   :  { %173 = vmatmul.mubr.msk.f32.vlgmr.msra.gmra.mxu0 %vm38_vm0, %v44_v14 }
 0x17c   :  { %v124_v15 = vpop.f32.mrf.mxu0 }
 0x17d   :  { %v128_v16 = vmul.f32 20.0, %v124_v15 }
 0x17e   :  { %v174_v17 = vpop.f32.mrf.mxu0 }
 0x17f   :  { %v145_v18 = vsel %vm144_vm2, %v128_v16, -inf }
 0x180   :  { %146 = vmax.xlane.f32.xlu1 %v145_v18 }
 0x184   :  { %134 = vadd.xlane.f32.xlu1 %v46_v4 }
 0x209   :  { %v147_v19 = vpop.xlane.xlu1 %146 }
 0x20a   :  { %v148_v20 = vsub.f32 %v128_v16, %v147_v19 }
 0x20c   :  { %v149_v21 = vmul.f32 1.442695, %v148_v20 }
 0x20d   :  { %v135_v22 = vpop.xlane.xlu1 %134 }
 0x20e   :  { %183 = vpow2.f32 %v149_v21  ;;  %v136_v23 = vmax.f32 %v135_v22, 1e-24 }
 0x210   :  { %185 = vrsqrt.f32 %v136_v23 }
 0x21b   :  { %v184_v24 = vpop.eup %183 }
 0x21c   :  { %v151_v25 = vsel %vm144_vm2, %v184_v24, 0.0 }
 0x21d   :  { %v186_v26 = vpop.eup %185  ;;  %152 = vadd.xlane.f32.xlu0 %v151_v25 }
 0x21e   :  { %v138_v27 = vmul.f32 %v186_v26, %v36_v0 }
 0x220   :  { %v139_v28 = vmul.f32 %v138_v27, %v44_v14 }
 0x222   :  { %v140_v29 = vsel %vm38_vm0, %v139_v28, 0.0 }
 0x223   :  { %141 = vadd.xlane.f32.xlu1 %v140_v29 }
 0x2a6   :  { %v153_v30 = vpop.xlane.xlu0 %152 }
 0x2a7   :  { %187 = vlog2.f32 %v153_v30 }
 0x2ac   :  { %v142_v32 = vpop.xlane.xlu1 %141 }
 0x2ad   :  { %v143_v35 = vmul.f32 20.0, %v142_v32 }
 0x2b4   :  { %v188_v31 = vpop.eup %187 }
 0x2b5   :  { %v155_v33 = vmul.f32 0.6931472, %v188_v31 }
 0x2b7   :  { %v156_v34 = vadd.f32 %v155_v33, %v147_v19 }
 0x2b9   :  { %v157_v36 = vsub.f32 %v156_v34, %v143_v35 }
 0x2bb   :  { %159 = vst.msk [vmem:[%s268_s2] sm:$0xff] %vm158_vm3, %v157_v36 }
 0x2bc   :  { %164 = vsyncpa [#allocation3], 1 }
 0x2bd   :  { %165 = vsyncpa [#allocation5], 1 }

</bundles_post_ra>
